<compile_context>
chip_gen: v7x
topology: tpu7x:2x2x1
jax: 0.10.0
libtpu: 0.0.40
codegen_flags: <defaults>
</compile_context>

<pallas_src>
import functools

import jax
import jax.numpy as jnp
from jax.experimental import pallas as pl
from jax.experimental.pallas import tpu as pltpu


def _round_up(x, m):
    return ((x + m - 1) // m) * m


def _dice_kernel(p_ref, t_ref, loss_ref, inter_acc, total_acc, *,
                 smooth, power, n_cols, n_rows, n_classes, tile_r, tile_s):
    i = pl.program_id(0)   # row-tile index      ("parallel")
    k = pl.program_id(1)   # spatial-tile index  ("arbitrary" reduction, innermost)

    @pl.when(k == 0)
    def _():
        inter_acc[...] = jnp.zeros_like(inter_acc)
        total_acc[...] = jnp.zeros_like(total_acc)

    # Lane masking is only needed when the spatial extent is ragged w.r.t. the
    # tile; statically skipped otherwise. Iota / base hoisted out of the loop.
    ragged = (n_cols % tile_s) != 0
    if ragged:
        lane = jax.lax.broadcasted_iota(jnp.int32, (tile_r, 128), 1)
        base = k * tile_s

    # Elementwise accumulation into 128-lane register partials (VPU only).
    # Chunks are read directly from the refs: lane-group aligned static slices
    # -> no relayout and no full-tile f32 temporaries in VMEM.
    n_chunks = tile_s // 128
    inter_part = jnp.zeros((tile_r, 128), jnp.float32)
    total_part = jnp.zeros((tile_r, 128), jnp.float32)
    for c in range(n_chunks):
        sl = slice(c * 128, (c + 1) * 128)
        pc = p_ref[:, sl].astype(jnp.float32)
        tc = t_ref[:, sl].astype(jnp.float32)
        if ragged:
            ok = (base + c * 128 + lane) < n_cols
            pc = jnp.where(ok, pc, 0.0)
            tc = jnp.where(ok, tc, 0.0)
        inter_part = inter_part + pc * tc
        if power == 2:
            total_part = total_part + (pc * pc + tc * tc)
        elif power == 1:
            total_part = total_part + (pc + tc)
        else:
            total_part = total_part + (pc ** power + tc ** power)
    inter_acc[...] += inter_part
    total_acc[...] += total_part

    @pl.when(k == pl.num_programs(1) - 1)
    def _():
        inter = jnp.sum(inter_acc[...], axis=1, keepdims=True)   # (tile_r, 1) XLU
        total = jnp.sum(total_acc[...], axis=1, keepdims=True)
        row_loss = -(2.0 * inter + smooth) / (total + smooth)
        # Drop background-channel rows (channel 0 of every batch element) and
        # any padded rows of a ragged last row tile.
        row = i * tile_r + jax.lax.broadcasted_iota(jnp.int32, (tile_r, 1), 0)
        valid = (row < n_rows) & (row % n_classes != 0)
        loss_ref[...] = jnp.where(valid, row_loss, 0.0)


def dice_loss(prediction, target, *, smooth=1.0, p=2,
              tile_s=None, tile_r=None, vmem_limit_bytes=48 * 1024 * 1024):
    """Equivalent of DiceLoss.forward(prediction, target, deep_supervision=False).

    prediction / target: (B, C, H, W); prediction should be softmax over C,
    target one-hot over C. Any float dtype (e.g. bf16) is accepted and cast to
    f32 inside the kernel, so halving input bytes is a free bandwidth win.
    """
    # TODO(synk): deep_supervision=True is just a weighted Python-level loop of
    # dice_loss calls over scales; not part of this kernel.
    B, C, H, W = prediction.shape
    assert target.shape == prediction.shape
    assert C >= 2, "DiceLoss drops channel 0; need at least 2 channels"
    assert p >= 1, "in-kernel zero masking of padded lanes requires p >= 1"

    n_rows = B * C           # channel-0 rows are streamed too, masked in-kernel
    S = H * W
    n_valid_rows = B * (C - 1)

    # Contiguous views -> free reshapes, no HBM copies.
    pred2d = prediction.reshape(n_rows, S)
    targ2d = target.reshape(n_rows, S)
    itemsize = pred2d.dtype.itemsize + targ2d.dtype.itemsize

    # Row tile: multiple of 8 (or the full row extent). >1 row tile lets the
    # "parallel" grid axis feed both v7x TensorCores.
    if tile_r is None:
        tile_r = 32 if (n_rows % 8 == 0 and n_rows > 32) else n_rows
    num_row_tiles = pl.cdiv(n_rows, tile_r)

    # Spatial tile: target ~1 MiB per input block per grid step (amortizes the
    # ~0.35 us/step overhead), capped at 16384 lanes (bounded unroll) and
    # clamped against a conservative VMEM budget for the double-buffered DMAs.
    if tile_s is None:
        target_lanes = (1 << 20) // max(1, tile_r * pred2d.dtype.itemsize)
        tile_s = min(16384, max(1024, target_lanes))
    tile_s = _round_up(min(tile_s, _round_up(S, 128)), 128)
    vmem_budget = 24 * 1024 * 1024
    per_col = 2 * tile_r * itemsize          # double-buffered, both inputs
    max_cols = max(128, (vmem_budget // per_col) // 128 * 128)
    tile_s = max(128, min(tile_s, max_cols))
    num_s_tiles = pl.cdiv(S, tile_s)

    kernel = functools.partial(
        _dice_kernel, smooth=float(smooth), power=p, n_cols=S,
        n_rows=n_rows, n_classes=C, tile_r=tile_r, tile_s=tile_s)

    row_losses = pl.pallas_call(
        kernel,
        out_shape=jax.ShapeDtypeStruct((num_row_tiles * tile_r, 1), jnp.float32),
        grid_spec=pltpu.PrefetchScalarGridSpec(
            num_scalar_prefetch=0,
            grid=(num_row_tiles, num_s_tiles),
            in_specs=[
                pl.BlockSpec((tile_r, tile_s), lambda i, k: (i, k)),
                pl.BlockSpec((tile_r, tile_s), lambda i, k: (i, k)),
            ],
            out_specs=pl.BlockSpec((tile_r, 1), lambda i, k: (i, 0)),
            scratch_shapes=[
                pltpu.VMEM((tile_r, 128), jnp.float32),   # intersection partials
                pltpu.VMEM((tile_r, 128), jnp.float32),   # total partials
            ],
        ),
        compiler_params=pltpu.CompilerParams(
            dimension_semantics=("parallel", "arbitrary"),
            vmem_limit_bytes=int(vmem_limit_bytes)),
    )(pred2d, targ2d)

    # Tiny finishing op: mean over (batch, class) rows; background / padded
    # rows were written as 0 by the kernel.
    return jnp.sum(row_losses) / float(n_valid_rows)


def _dice_loss_ref(prediction, target, smooth=1.0, p=2):
    pred = prediction[:, 1:, :, :]
    targ = target[:, 1:, :, :]
    bs, cl = pred.shape[0], pred.shape[1]
    pr = pred.reshape(bs, cl, -1).astype(jnp.float32)
    tr = targ.reshape(bs, cl, -1).astype(jnp.float32)
    inter = jnp.sum(pr * tr, axis=2)
    total = jnp.sum(pr ** p + tr ** p, axis=2)
    loss = -(2 * inter + smooth) / (total + smooth)
    return jnp.mean(jnp.mean(loss, axis=1))


def _make_inputs(key, B, C, H, W):
    k1, k2 = jax.random.split(key)
    logits = jax.random.normal(k1, (B, C, H, W), dtype=jnp.float32)
    prediction = jax.nn.softmax(logits, axis=1)
    labels = jax.random.randint(k2, (B, H, W), 0, C)
    target = jax.nn.one_hot(labels, C, axis=1, dtype=jnp.float32)  # (B, C, H, W)
    return prediction, target


if __name__ == "__main__":
    key = jax.random.PRNGKey(0)
    k0, k1, k2, k3 = jax.random.split(key, 4)

    # Primary spec-sized check.
    prediction, target = _make_inputs(k0, 2, 4, 16, 16)
    loss = jax.block_until_ready(dice_loss(prediction, target, smooth=1.0, p=2))
    ref = _dice_loss_ref(prediction, target, smooth=1.0, p=2)
    assert jnp.allclose(loss, ref, rtol=1e-5, atol=1e-5), (loss, ref)

    # Ragged spatial extent (S < 128, lane masking path), p=1.
    prediction, target = _make_inputs(k1, 2, 3, 9, 7)
    loss = jax.block_until_ready(dice_loss(prediction, target, smooth=1.0, p=1))
    ref = _dice_loss_ref(prediction, target, smooth=1.0, p=1)
    assert jnp.allclose(loss, ref, rtol=1e-5, atol=1e-5), (loss, ref)

    # Multiple row tiles (ragged last row tile) + multiple ragged spatial tiles.
    prediction, target = _make_inputs(k2, 5, 8, 12, 11)
    loss = jax.block_until_ready(
        dice_loss(prediction, target, smooth=1.0, p=2, tile_s=128, tile_r=32))
    ref = _dice_loss_ref(prediction, target, smooth=1.0, p=2)
    assert jnp.allclose(loss, ref, rtol=1e-5, atol=1e-5), (loss, ref)

    # Larger spatial extent exercising the multi-chunk inner accumulation path
    # (default heuristics) and a forced multi-spatial-tile split.
    prediction, target = _make_inputs(k3, 2, 4, 64, 64)
    loss = jax.block_until_ready(dice_loss(prediction, target, smooth=1.0, p=2))
    ref = _dice_loss_ref(prediction, target, smooth=1.0, p=2)
    assert jnp.allclose(loss, ref, rtol=1e-5, atol=1e-5), (loss, ref)
    loss = jax.block_until_ready(
        dice_loss(prediction, target, smooth=1.0, p=2, tile_s=1024))
    assert jnp.allclose(loss, ref, rtol=1e-5, atol=1e-5), (loss, ref)

    print("KERNEL_OK")
</pallas_src>

<mosaic_0001>
module attributes {stable_mosaic.version = 11 : i64} {
  func.func @_dice_kernel(%arg0: i32, %arg1: i32, %arg2: memref<8x256xf32, #tpu.memory_space<vmem>>, %arg3: memref<8x256xf32, #tpu.memory_space<vmem>>, %arg4: memref<8x1xf32, #tpu.memory_space<vmem>>, %arg5: memref<8x128xf32, #tpu.memory_space<vmem>>, %arg6: memref<8x128xf32, #tpu.memory_space<vmem>>) attributes {dimension_semantics = [#tpu.dimension_semantics<parallel>, #tpu.dimension_semantics<arbitrary>], iteration_bounds = array<i64: 1, 1>, scalar_prefetch = 0 : i64, scratch_operands = 2 : i64, tpu.core_type = #tpu.core_type<tc>, window_params = [{transform_indices = @transform_0, window_bounds = array<i64: 8, 256>}, {transform_indices = @transform_1, window_bounds = array<i64: 8, 256>}, {transform_indices = @transform_2, window_bounds = array<i64: 8, 1>}]} {
    %c0_i32 = arith.constant 0 : i32
    %0 = arith.cmpi eq, %arg1, %c0_i32 : i32
    %1 = arith.extui %0 : i1 to i32
    %c0_i32_0 = arith.constant 0 : i32
    %2 = arith.cmpi ne, %1, %c0_i32_0 : i32
    scf.if %2 {
      %cst_18 = arith.constant 0.000000e+00 : f32
      %30 = vector.broadcast %cst_18 : f32 to vector<8x128xf32>
      %c0_19 = arith.constant 0 : index
      %c0_20 = arith.constant 0 : index
      %31 = vector.load %arg5[%c0_19, %c0_20] : memref<8x128xf32, #tpu.memory_space<vmem>>, vector<8x128xf32>
      tpu.vector_store %arg5[%c0_19, %c0_20], %30 {strides = array<i32>} : memref<8x128xf32, #tpu.memory_space<vmem>>, vector<8x128xf32>,
      %cst_21 = arith.constant 0.000000e+00 : f32
      %32 = vector.broadcast %cst_21 : f32 to vector<8x128xf32>
      %c0_22 = arith.constant 0 : index
      %c0_23 = arith.constant 0 : index
      %33 = vector.load %arg6[%c0_22, %c0_23] : memref<8x128xf32, #tpu.memory_space<vmem>>, vector<8x128xf32>
      tpu.vector_store %arg6[%c0_22, %c0_23], %32 {strides = array<i32>} : memref<8x128xf32, #tpu.memory_space<vmem>>, vector<8x128xf32>,
    } else {
    }
    %cst = arith.constant 0.000000e+00 : f32
    %3 = vector.broadcast %cst : f32 to vector<8x128xf32>
    %cst_1 = arith.constant 0.000000e+00 : f32
    %4 = vector.broadcast %cst_1 : f32 to vector<8x128xf32>
    %c0 = arith.constant 0 : index
    %c0_2 = arith.constant 0 : index
    %5 = vector.load %arg2[%c0, %c0_2] : memref<8x256xf32, #tpu.memory_space<vmem>>, vector<8x128xf32>
    %c0_3 = arith.constant 0 : index
    %c0_4 = arith.constant 0 : index
    %6 = vector.load %arg3[%c0_3, %c0_4] : memref<8x256xf32, #tpu.memory_space<vmem>>, vector<8x128xf32>
    %7 = arith.mulf %5, %6 : vector<8x128xf32>
    %8 = arith.addf %3, %7 : vector<8x128xf32>
    %9 = arith.mulf %5, %5 : vector<8x128xf32>
    %10 = arith.mulf %6, %6 : vector<8x128xf32>
    %11 = arith.addf %9, %10 : vector<8x128xf32>
    %12 = arith.addf %4, %11 : vector<8x128xf32>
    %c0_5 = arith.constant 0 : index
    %c128 = arith.constant 128 : index
    %13 = vector.load %arg2[%c0_5, %c128] : memref<8x256xf32, #tpu.memory_space<vmem>>, vector<8x128xf32>
    %c0_6 = arith.constant 0 : index
    %c128_7 = arith.constant 128 : index
    %14 = vector.load %arg3[%c0_6, %c128_7] : memref<8x256xf32, #tpu.memory_space<vmem>>, vector<8x128xf32>
    %15 = arith.mulf %13, %14 : vector<8x128xf32>
    %16 = arith.addf %8, %15 : vector<8x128xf32>
    %17 = arith.mulf %13, %13 : vector<8x128xf32>
    %18 = arith.mulf %14, %14 : vector<8x128xf32>
    %19 = arith.addf %17, %18 : vector<8x128xf32>
    %20 = arith.addf %12, %19 : vector<8x128xf32>
    %c0_8 = arith.constant 0 : index
    %c0_9 = arith.constant 0 : index
    %21 = vector.load %arg5[%c0_8, %c0_9] : memref<8x128xf32, #tpu.memory_space<vmem>>, vector<8x128xf32>
    %22 = arith.addf %21, %16 : vector<8x128xf32>
    %c0_10 = arith.constant 0 : index
    %c0_11 = arith.constant 0 : index
    %23 = vector.load %arg5[%c0_10, %c0_11] : memref<8x128xf32, #tpu.memory_space<vmem>>, vector<8x128xf32>
    tpu.vector_store %arg5[%c0_10, %c0_11], %22 {strides = array<i32>} : memref<8x128xf32, #tpu.memory_space<vmem>>, vector<8x128xf32>,
    %c0_12 = arith.constant 0 : index
    %c0_13 = arith.constant 0 : index
    %24 = vector.load %arg6[%c0_12, %c0_13] : memref<8x128xf32, #tpu.memory_space<vmem>>, vector<8x128xf32>
    %25 = arith.addf %24, %20 : vector<8x128xf32>
    %c0_14 = arith.constant 0 : index
    %c0_15 = arith.constant 0 : index
    %26 = vector.load %arg6[%c0_14, %c0_15] : memref<8x128xf32, #tpu.memory_space<vmem>>, vector<8x128xf32>
    tpu.vector_store %arg6[%c0_14, %c0_15], %25 {strides = array<i32>} : memref<8x128xf32, #tpu.memory_space<vmem>>, vector<8x128xf32>,
    %c0_i32_16 = arith.constant 0 : i32
    %27 = arith.cmpi eq, %arg1, %c0_i32_16 : i32
    %28 = arith.extui %27 : i1 to i32
    %c0_i32_17 = arith.constant 0 : i32
    %29 = arith.cmpi ne, %28, %c0_i32_17 : i32
    scf.if %29 {
      %c0_18 = arith.constant 0 : index
      %c0_19 = arith.constant 0 : index
      %30 = vector.load %arg5[%c0_18, %c0_19] : memref<8x128xf32, #tpu.memory_space<vmem>>, vector<8x128xf32>
      %cst_20 = arith.constant dense<0.000000e+00> : vector<8xf32>
      %31 = vector.multi_reduction <add>, %30, %cst_20 [1] : vector<8x128xf32> to vector<8xf32>
      %32 = vector.shape_cast %31 : vector<8xf32> to vector<8x1xf32>
      %c0_21 = arith.constant 0 : index
      %c0_22 = arith.constant 0 : index
      %33 = vector.load %arg6[%c0_21, %c0_22] : memref<8x128xf32, #tpu.memory_space<vmem>>, vector<8x128xf32>
      %cst_23 = arith.constant dense<0.000000e+00> : vector<8xf32>
      %34 = vector.multi_reduction <add>, %33, %cst_23 [1] : vector<8x128xf32> to vector<8xf32>
      %35 = vector.shape_cast %34 : vector<8xf32> to vector<8x1xf32>
      %cst_24 = arith.constant 2.000000e+00 : f32
      %36 = vector.broadcast %cst_24 : f32 to vector<8x1xf32>
      %37 = arith.mulf %36, %32 : vector<8x1xf32>
      %cst_25 = arith.constant 1.000000e+00 : f32
      %38 = vector.broadcast %cst_25 : f32 to vector<8x1xf32>
      %39 = arith.addf %37, %38 : vector<8x1xf32>
      %cst_26 = arith.constant 0.000000e+00 : f32
      %40 = vector.broadcast %cst_26 : f32 to vector<8x1xf32>
      %41 = arith.subf %40, %39 : vector<8x1xf32>
      %cst_27 = arith.constant 1.000000e+00 : f32
      %42 = vector.broadcast %cst_27 : f32 to vector<8x1xf32>
      %43 = arith.addf %35, %42 : vector<8x1xf32>
      %44 = arith.divf %41, %43 : vector<8x1xf32>
      %c8_i32 = arith.constant 8 : i32
      %45 = arith.muli %arg0, %c8_i32 : i32
      %46 = tpu.iota {dimensions = array<i32: 0>} : vector<8x1xi32>
      %47 = vector.broadcast %45 : i32 to vector<8x1xi32>
      %48 = arith.addi %47, %46 : vector<8x1xi32>
      %c8_i32_28 = arith.constant 8 : i32
      %49 = vector.broadcast %c8_i32_28 : i32 to vector<8x1xi32>
      %50 = arith.cmpi slt, %48, %49 : vector<8x1xi32>
      %c4_i32 = arith.constant 4 : i32
      %c0_i32_29 = arith.constant 0 : i32
      %51 = arith.cmpi eq, %c4_i32, %c0_i32_29 : i32
      %c1_i32 = arith.constant 1 : i32
      %52 = arith.select %51, %c1_i32, %c4_i32 : i32
      %53 = vector.broadcast %52 : i32 to vector<8x1xi32>
      %54 = arith.remsi %48, %53 : vector<8x1xi32>
      %c0_i32_30 = arith.constant 0 : i32
      %55 = vector.broadcast %c0_i32_30 : i32 to vector<8x1xi32>
      %56 = arith.cmpi ne, %54, %55 : vector<8x1xi32>
      %c0_i32_31 = arith.constant 0 : i32
      %57 = vector.broadcast %c0_i32_31 : i32 to vector<8x1xi32>
      %58 = arith.cmpi slt, %54, %57 : vector<8x1xi32>
      %c0_i32_32 = arith.constant 0 : i32
      %59 = arith.cmpi slt, %52, %c0_i32_32 : i32
      %60 = vector.broadcast %59 : i1 to vector<8x1xi1>
      %61 = vector.broadcast %60 : vector<8x1xi1> to vector<8x1xi1>
      %62 = arith.xori %58, %61 : vector<8x1xi1>
      %63 = arith.andi %62, %56 : vector<8x1xi1>
      %64 = vector.broadcast %52 : i32 to vector<8x1xi32>
      %65 = arith.addi %54, %64 : vector<8x1xi32>
      %66 = arith.select %63, %65, %54 : vector<8x1xi1>, vector<8x1xi32>
      %c0_i32_33 = arith.constant 0 : i32
      %67 = vector.broadcast %c0_i32_33 : i32 to vector<8x1xi32>
      %68 = arith.cmpi ne, %66, %67 : vector<8x1xi32>
      %69 = arith.andi %50, %68 : vector<8x1xi1>
      %cst_34 = arith.constant 0.000000e+00 : f32
      %70 = vector.broadcast %cst_34 : f32 to vector<8x1xf32>
      %71 = arith.select %69, %44, %70 : vector<8x1xi1>, vector<8x1xf32>
      %c0_35 = arith.constant 0 : index
      %c0_36 = arith.constant 0 : index
      %72 = vector.load %arg4[%c0_35, %c0_36] : memref<8x1xf32, #tpu.memory_space<vmem>>, vector<8x1xf32>
      tpu.vector_store %arg4[%c0_35, %c0_36], %71 {strides = array<i32>} : memref<8x1xf32, #tpu.memory_space<vmem>>, vector<8x1xf32>,
    } else {
    }
    return
  }
  func.func @transform_0(%arg0: i32, %arg1: i32) -> (i32, i32) {
    %c0_i32 = arith.constant 0 : i32
    return %arg0, %arg1 : i32, i32
  }
  func.func @transform_1(%arg0: i32, %arg1: i32) -> (i32, i32) {
    %c0_i32 = arith.constant 0 : i32
    return %arg0, %arg1 : i32, i32
  }
  func.func @transform_2(%arg0: i32, %arg1: i32) -> (i32, i32) {
    %c0_i32 = arith.constant 0 : i32
    %c0_i32_0 = arith.constant 0 : i32
    return %arg0, %c0_i32 : i32, i32
  }
}

</mosaic_0001>

<bundles_post_ra>
// kernel: tpu_custom_call.1
= control target key start
LH: loop header
LB: loop body
LE: loop exit
PB: predicated region body
PF: predicated region fallthrough
CT: control target
= control target key end

     0   :  { %7 = vsyncpa [#allocation5], 0  ;;  %s203_s0 = inlined_call_operand.hbm [shape: f32[8,256], index: 0, kind: input, shape index: {}]   ;;  %s204_s1 = inlined_call_operand.hbm [shape: f32[8,256], index: 1, kind: input, shape index: {}]   ;;  %s205_s2 = inlined_call_operand.vmem [shape: f32[8,1], index: 2, kind: output, shape index: {}]  }
   0x1   :  { %8 = vsyncpa [#allocation7], 0  ;;  %s159_s9 = smov [#allocation4]   ;;  %s160_s11 = smov [#allocation6]  }
   0x2   :  { %s15_s10 = sshll.u32 %s159_s9, 4  ;;  %s25_s12 = sshll.u32 %s160_s11, 4  ;;  %s16_s10 = int_to_ptr.vmem [resolvable:$true] %s15_s10  ;;  %s26_s12 = int_to_ptr.vmem [resolvable:$true] %s25_s12 }
   0x3   :  { %s111_s15 = scalar_lea.hbm %s203_s0, 256 }
   0x4   :  { %p112_p0 = scmp.ne.s32.totalorder %s203_s0, %s111_s15  ;;  %p115_p1 = scmp.lt.u32.totalorder %s111_s15, %s203_s0 }
   0x6   :  { %p117_p2 = pnand %p115_p1, %p112_p0 }
   0x8   :  { %120 = shalt.err (!%p117_p2)
}
   0x9   :  { %s121_s20 = scalar_lea.vmem %s16_s10, 256  ;;  %p126_p4 = scmp.lt.s32.totalorder %s16_s10, %s16_s10 }
   0xa   :  { %p122_p3 = scmp.ne.s32.totalorder %s16_s10, %s121_s20  ;;  %p127_p5 = scmp.lt.s32.totalorder %s121_s20, %s121_s20 }
   0xc   :  { %p128_p6 = por %p127_p5, %p126_p4 }
   0xe   :  { %p129_p7 = pnand %p128_p6, %p122_p3 }
  0x10   :  { %132 = shalt.err (!%p129_p7)
}
  0x11   :  { %18 = dma.hbm_to_vmem [thread:$0]  %s203_s0, 256, %s16_s10, [#allocation5]  }
  0x12   :  { %s133_s25 = scalar_lea.hbm %s204_s1, 256 }
  0x13   :  { %p134_p8 = scmp.ne.s32.totalorder %s204_s1, %s133_s25  ;;  %p137_p9 = scmp.lt.u32.totalorder %s133_s25, %s204_s1 }
  0x15   :  { %p139_p10 = pnand %p137_p9, %p134_p8 }
  0x17   :  { %142 = shalt.err (!%p139_p10)
}
  0x18   :  { %s143_s30 = scalar_lea.vmem %s26_s12, 256  ;;  %p148_p12 = scmp.lt.s32.totalorder %s26_s12, %s26_s12 }
  0x19   :  { %p144_p11 = scmp.ne.s32.totalorder %s26_s12, %s143_s30  ;;  %p149_p13 = scmp.lt.s32.totalorder %s143_s30, %s143_s30 }
  0x1b   :  { %p150_p0 = por %p149_p13, %p148_p12 }
  0x1d   :  { %p151_p1 = pnand %p150_p0, %p144_p11 }
  0x1f   :  { %154 = shalt.err (!%p151_p1)
}
  0x20   :  { %28 = dma.hbm_to_vmem [thread:$0]  %s204_s1, 256, %s26_s12, [#allocation7]  }
  0x21   :  { %155 = dma.done.wait [#allocation5], 256  }
  0x22   :  { %156 = vsyncadd [#allocation5], 4294967040 }
  0x23   :  { %157 = dma.done.wait [#allocation7], 256  }
  0x24   :  { %158 = vsyncadd [#allocation7], 4294967040  ;;  %v41_v0 = vld [vmem:[#allocation4] sm:$0xff]  ;;  %v42_v1 = vld [vmem:[#allocation6] sm:$0xff]  ;;  %v79_v16 = vlaneseq  ;;  %vm99_vm1 = vcmask 7168  }
  0x25   :  { %v49_v2 = vld [vmem:[#allocation4 + $0x8] sm:$0xff]  ;;  %v45_v3 = vmul.f32 %v41_v0, %v41_v0  ;;  %v46_v4 = vmul.f32 %v42_v1, %v42_v1  ;;  %v50_v5 = vld [vmem:[#allocation6 + $0x8] sm:$0xff]  ;;  %v43_v10 = vmul.f32 %v42_v1, %v41_v0 }
  0x26   :  { %v53_v6 = vmul.f32 %v49_v2, %v49_v2  ;;  %v54_v7 = vmul.f32 %v50_v5, %v50_v5  ;;  %v51_v11 = vmul.f32 %v50_v5, %v49_v2  ;;  %v80_v18 = vshrl.u32 %v79_v16, 7 }
  0x27   :  { %v47_v8 = vadd.f32 %v46_v4, %v45_v3 }
  0x28   :  { %v55_v9 = vadd.f32 %v54_v7, %v53_v6  ;;  %v52_v13 = vadd.f32 %v51_v11, %v43_v10  ;;  %v88_v21 = vand.u32 3, %v80_v18 }
  0x2a   :  { %v56_v12 = vadd.f32 %v55_v9, %v47_v8  ;;  %vm96_vm0 = vcmp.ne.s32.totalorder %v88_v21, 0 }
  0x2c   :  { %70 = vadd.xlane.f32.xlu0 %v56_v12 }
  0x30   :  { %67 = vadd.xlane.f32.xlu0 %v52_v13 }
  0xb9   :  { %v71_v14 = vpop.xlane.xlu0 %70 }
  0xba   :  { %v75_v15 = vadd.f32 1.0, %v71_v14 }
  0xbc   :  { %109 = vrcp.f32 %v75_v15 }
  0xbd   :  { %v68_v17 = vpop.xlane.xlu0 %67 }
  0xbe   :  { %v72_v19 = vmul.f32 2.0, %v68_v17 }
  0xc0   :  { %v73_v20 = vadd.f32 1.0, %v72_v19 }
  0xc2   :  { %v74_v22 = vsub.f32 0.0, %v73_v20 }
  0xc6   :  { %v110_v23 = vpop.eup %109 }
  0xc7   :  { %v77_v24 = vmul.f32 %v110_v23, %v74_v22 }
  0xc9   :  { %v98_v25 = vsel %vm96_vm0, %v77_v24, 0.0 }
  0xca   :  { %100 = vst.msk [vmem:[%s205_s2] sm:$0xff] %vm99_vm1, %v98_v25 }
  0xcb   :  { %105 = vsyncpa [#allocation5], 1 }
  0xcc   :  { %106 = vsyncpa [#allocation7], 1 }

</bundles_post_ra>
